<compile_context>
chip_gen: v5e
topology: v5e:2x2
jax: 0.10.0
libtpu: 0.0.40
codegen_flags: <defaults>
</compile_context>

<pallas_src>
import math

import jax
import jax.numpy as jnp
from jax.experimental import pallas as pl
from jax.experimental.pallas import tpu as pltpu


def _level_params(H, W, out_side):
    """Per-level (kh, kw, sh, sw, oh, ow) exactly as nn.MaxPool2d computes them."""
    params = []
    for n in out_side:
        kh = math.ceil(H / n)
        kw = math.ceil(W / n)
        sh = H // n
        sw = W // n
        oh = (H - kh) // sh + 1
        ow = (W - kw) // sw + 1
        params.append((kh, kw, sh, sw, oh, ow))
    return params


def _make_spp_kernel(params, offsets):
    """Kernel body (one (batch, channel-tile) block per grid step).

    Refs (batch dim squeezed by the BlockSpec):
      x_ref : (H, W, TC)       NHWC slab -> channels on the lane axis
      o_ref : (S_total, TC)    fused lane-dense output, all pyramid levels
      h_ref : (max_oh, W, TC)  VMEM scratch for the H-pooled intermediate
    """

    def kernel(x_ref, o_ref, h_ref):
        for (kh, kw, sh, sw, oh, ow), off in zip(params, offsets):
            # ---- Pass 1: running max over the kh kernel-row offsets --------
            # Strided reads along H (outer dim): pure VPU maximum of full
            # (oh, W, TC) slabs; the input slab is read ~once per level.
            acc_h = x_ref[pl.ds(0, oh, sh), :, :]
            for di in range(1, kh):
                acc_h = jnp.maximum(acc_h, x_ref[pl.ds(di, oh, sh), :, :])
            h_ref[pl.ds(0, oh), :, :] = acc_h                    # (oh, W, TC)

            # ---- Pass 2: running max over the kw kernel-col offsets --------
            # Strided reads along W on the (small) reduced intermediate.
            acc = h_ref[pl.ds(0, oh), pl.ds(0, ow, sw), :]
            for dj in range(1, kw):
                acc = jnp.maximum(acc, h_ref[pl.ds(0, oh), pl.ds(dj, ow, sw), :])
            # acc: (oh, ow, TC)

            # ---- Store: lane-dense (ow, TC) rows, row-major over (i, j) ----
            for i in range(oh):
                o_ref[pl.ds(off + i * ow, ow), :] = acc[i]

    return kernel


def _pick_channel_tile(C, per_channel_bytes, budget_bytes):
    """Largest channel tile (multiple of 128 dividing C, or C itself) within budget."""
    if per_channel_bytes * C <= budget_bytes or C % 128 != 0:
        return C
    tc = C
    while tc >= 128:
        if C % tc == 0 and per_channel_bytes * tc <= budget_bytes:
            return tc
        tc -= 128
    return 128


def spp_pallas(x, out_side):
    """SPP forward.  x is NCHW (same as the PyTorch module); returns (B, C*sum(oh*ow))."""
    B, C, H, W = x.shape
    params = _level_params(H, W, out_side)

    sizes = [oh * ow for (_, _, _, _, oh, ow) in params]
    offsets = [sum(sizes[:k]) for k in range(len(sizes))]
    s_total = sum(sizes)
    max_oh = max(oh for (_, _, _, _, oh, _) in params)

    itemsize = jnp.dtype(x.dtype).itemsize
    # double-buffered input + output blocks plus the single-buffered scratch
    per_channel_bytes = itemsize * (2 * H * W + 2 * s_total + max_oh * W)
    # Budget sized so blocks comfortably fit v7x's smaller scoped VMEM; v6e/v5e
    # simply get the biggest (often full-C) tile.
    tc = _pick_channel_tile(C, per_channel_bytes, budget_bytes=24 << 20)
    n_ct = C // tc

    vmem_needed = per_channel_bytes * tc
    vmem_limit = int(min(64 << 20, max(32 << 20, 2 * vmem_needed)))

    # NHWC so channels sit on the lane axis inside the kernel.
    x_nhwc = jnp.transpose(x, (0, 2, 3, 1))  # (B, H, W, C)

    kernel = _make_spp_kernel(params, offsets)

    out = pl.pallas_call(
        kernel,
        out_shape=jax.ShapeDtypeStruct((B, s_total, C), x.dtype),
        grid=(B, n_ct),
        in_specs=[pl.BlockSpec((None, H, W, tc), lambda b, c: (b, 0, 0, c))],
        out_specs=pl.BlockSpec((None, s_total, tc), lambda b, c: (b, 0, c)),
        scratch_shapes=[pltpu.VMEM((max_oh, W, tc), x.dtype)],
        compiler_params=pltpu.CompilerParams(
            dimension_semantics=("parallel", "parallel"),
            vmem_limit_bytes=vmem_limit,
        ),
    )(x_nhwc)

    # Glue: per level, reorder (B, oh*ow, C) -> PyTorch's C-major flatten and concat.
    pieces = []
    for (_, _, _, _, oh, ow), off in zip(params, offsets):
        lvl = out[:, off:off + oh * ow, :]                       # (B, oh*ow, C)
        pieces.append(jnp.transpose(lvl, (0, 2, 1)).reshape(B, C * oh * ow))
    return jnp.concatenate(pieces, axis=1)


def spp_reference(x, out_side):
    """Pure-JAX reference (NCHW) for correctness checking."""
    B, C, H, W = x.shape
    outs = []
    for (kh, kw, sh, sw, oh, ow) in _level_params(H, W, out_side):
        rows = []
        for i in range(oh):
            cols = []
            for j in range(ow):
                cols.append(
                    jnp.max(x[:, :, i * sh:i * sh + kh, j * sw:j * sw + kw],
                            axis=(2, 3))
                )
            rows.append(jnp.stack(cols, axis=-1))     # (B, C, ow)
        y = jnp.stack(rows, axis=-2)                  # (B, C, oh, ow)
        outs.append(y.reshape(B, -1))
    return jnp.concatenate(outs, axis=1)


if __name__ == "__main__":
    key = jax.random.PRNGKey(0)
    B, C, H, W = 2, 4, 16, 16
    out_side = (1, 2, 4)

    x = jax.random.normal(key, (B, C, H, W), dtype=jnp.float32)

    out = spp_pallas(x, out_side)
    out = jax.block_until_ready(out)

    ref = spp_reference(x, out_side)
    expected_cols = C * sum(oh * ow for (_, _, _, _, oh, ow)
                            in _level_params(H, W, out_side))
    assert out.shape == (B, expected_cols), (out.shape, expected_cols)
    assert jnp.allclose(out, ref, atol=1e-6, rtol=1e-6), "mismatch vs reference"

    print("KERNEL_OK")
</pallas_src>

<mosaic_0001>
module attributes {stable_mosaic.version = 11 : i64} {
  func.func @kernel(%arg0: i32, %arg1: i32, %arg2: memref<1x16x16x4xf32, #tpu.memory_space<vmem>>, %arg3: memref<1x21x4xf32, #tpu.memory_space<vmem>>, %arg4: memref<4x16x4xf32, #tpu.memory_space<vmem>>) attributes {dimension_semantics = [#tpu.dimension_semantics<parallel>, #tpu.dimension_semantics<parallel>], iteration_bounds = array<i64: 2, 1>, scalar_prefetch = 0 : i64, scratch_operands = 1 : i64, tpu.core_type = #tpu.core_type<tc>, window_params = [{transform_indices = @transform_0, window_bounds = array<i64: 1, 16, 16, 4>}, {transform_indices = @transform_1, window_bounds = array<i64: 1, 21, 4>}]} {
    %c0 = arith.constant 0 : index
    %c0_0 = arith.constant 0 : index
    %c0_1 = arith.constant 0 : index
    %c0_2 = arith.constant 0 : index
    %0 = tpu.strided_load %arg2[%c0, %c0_0, %c0_1, %c0_2] {strides = array<i32: 1, 16, 1, 1>} : memref<1x16x16x4xf32, #tpu.memory_space<vmem>>, vector<1x1x16x4xf32>
    %1 = vector.shape_cast %0 : vector<1x1x16x4xf32> to vector<1x16x4xf32>
    %c0_3 = arith.constant 0 : index
    %c1 = arith.constant 1 : index
    %c0_4 = arith.constant 0 : index
    %c0_5 = arith.constant 0 : index
    %2 = tpu.strided_load %arg2[%c0_3, %c1, %c0_4, %c0_5] {strides = array<i32: 1, 16, 1, 1>} : memref<1x16x16x4xf32, #tpu.memory_space<vmem>>, vector<1x1x16x4xf32>
    %3 = vector.shape_cast %2 : vector<1x1x16x4xf32> to vector<1x16x4xf32>
    %4 = arith.maximumf %1, %3 : vector<1x16x4xf32>
    %c0_6 = arith.constant 0 : index
    %c2 = arith.constant 2 : index
    %c0_7 = arith.constant 0 : index
    %c0_8 = arith.constant 0 : index
    %5 = tpu.strided_load %arg2[%c0_6, %c2, %c0_7, %c0_8] {strides = array<i32: 1, 16, 1, 1>} : memref<1x16x16x4xf32, #tpu.memory_space<vmem>>, vector<1x1x16x4xf32>
    %6 = vector.shape_cast %5 : vector<1x1x16x4xf32> to vector<1x16x4xf32>
    %7 = arith.maximumf %4, %6 : vector<1x16x4xf32>
    %c0_9 = arith.constant 0 : index
    %c3 = arith.constant 3 : index
    %c0_10 = arith.constant 0 : index
    %c0_11 = arith.constant 0 : index
    %8 = tpu.strided_load %arg2[%c0_9, %c3, %c0_10, %c0_11] {strides = array<i32: 1, 16, 1, 1>} : memref<1x16x16x4xf32, #tpu.memory_space<vmem>>, vector<1x1x16x4xf32>
    %9 = vector.shape_cast %8 : vector<1x1x16x4xf32> to vector<1x16x4xf32>
    %10 = arith.maximumf %7, %9 : vector<1x16x4xf32>
    %c0_12 = arith.constant 0 : index
    %c4 = arith.constant 4 : index
    %c0_13 = arith.constant 0 : index
    %c0_14 = arith.constant 0 : index
    %11 = tpu.strided_load %arg2[%c0_12, %c4, %c0_13, %c0_14] {strides = array<i32: 1, 16, 1, 1>} : memref<1x16x16x4xf32, #tpu.memory_space<vmem>>, vector<1x1x16x4xf32>
    %12 = vector.shape_cast %11 : vector<1x1x16x4xf32> to vector<1x16x4xf32>
    %13 = arith.maximumf %10, %12 : vector<1x16x4xf32>
    %c0_15 = arith.constant 0 : index
    %c5 = arith.constant 5 : index
    %c0_16 = arith.constant 0 : index
    %c0_17 = arith.constant 0 : index
    %14 = tpu.strided_load %arg2[%c0_15, %c5, %c0_16, %c0_17] {strides = array<i32: 1, 16, 1, 1>} : memref<1x16x16x4xf32, #tpu.memory_space<vmem>>, vector<1x1x16x4xf32>
    %15 = vector.shape_cast %14 : vector<1x1x16x4xf32> to vector<1x16x4xf32>
    %16 = arith.maximumf %13, %15 : vector<1x16x4xf32>
    %c0_18 = arith.constant 0 : index
    %c6 = arith.constant 6 : index
    %c0_19 = arith.constant 0 : index
    %c0_20 = arith.constant 0 : index
    %17 = tpu.strided_load %arg2[%c0_18, %c6, %c0_19, %c0_20] {strides = array<i32: 1, 16, 1, 1>} : memref<1x16x16x4xf32, #tpu.memory_space<vmem>>, vector<1x1x16x4xf32>
    %18 = vector.shape_cast %17 : vector<1x1x16x4xf32> to vector<1x16x4xf32>
    %19 = arith.maximumf %16, %18 : vector<1x16x4xf32>
    %c0_21 = arith.constant 0 : index
    %c7 = arith.constant 7 : index
    %c0_22 = arith.constant 0 : index
    %c0_23 = arith.constant 0 : index
    %20 = tpu.strided_load %arg2[%c0_21, %c7, %c0_22, %c0_23] {strides = array<i32: 1, 16, 1, 1>} : memref<1x16x16x4xf32, #tpu.memory_space<vmem>>, vector<1x1x16x4xf32>
    %21 = vector.shape_cast %20 : vector<1x1x16x4xf32> to vector<1x16x4xf32>
    %22 = arith.maximumf %19, %21 : vector<1x16x4xf32>
    %c0_24 = arith.constant 0 : index
    %c8 = arith.constant 8 : index
    %c0_25 = arith.constant 0 : index
    %c0_26 = arith.constant 0 : index
    %23 = tpu.strided_load %arg2[%c0_24, %c8, %c0_25, %c0_26] {strides = array<i32: 1, 16, 1, 1>} : memref<1x16x16x4xf32, #tpu.memory_space<vmem>>, vector<1x1x16x4xf32>
    %24 = vector.shape_cast %23 : vector<1x1x16x4xf32> to vector<1x16x4xf32>
    %25 = arith.maximumf %22, %24 : vector<1x16x4xf32>
    %c0_27 = arith.constant 0 : index
    %c9 = arith.constant 9 : index
    %c0_28 = arith.constant 0 : index
    %c0_29 = arith.constant 0 : index
    %26 = tpu.strided_load %arg2[%c0_27, %c9, %c0_28, %c0_29] {strides = array<i32: 1, 16, 1, 1>} : memref<1x16x16x4xf32, #tpu.memory_space<vmem>>, vector<1x1x16x4xf32>
    %27 = vector.shape_cast %26 : vector<1x1x16x4xf32> to vector<1x16x4xf32>
    %28 = arith.maximumf %25, %27 : vector<1x16x4xf32>
    %c0_30 = arith.constant 0 : index
    %c10 = arith.constant 10 : index
    %c0_31 = arith.constant 0 : index
    %c0_32 = arith.constant 0 : index
    %29 = tpu.strided_load %arg2[%c0_30, %c10, %c0_31, %c0_32] {strides = array<i32: 1, 16, 1, 1>} : memref<1x16x16x4xf32, #tpu.memory_space<vmem>>, vector<1x1x16x4xf32>
    %30 = vector.shape_cast %29 : vector<1x1x16x4xf32> to vector<1x16x4xf32>
    %31 = arith.maximumf %28, %30 : vector<1x16x4xf32>
    %c0_33 = arith.constant 0 : index
    %c11 = arith.constant 11 : index
    %c0_34 = arith.constant 0 : index
    %c0_35 = arith.constant 0 : index
    %32 = tpu.strided_load %arg2[%c0_33, %c11, %c0_34, %c0_35] {strides = array<i32: 1, 16, 1, 1>} : memref<1x16x16x4xf32, #tpu.memory_space<vmem>>, vector<1x1x16x4xf32>
    %33 = vector.shape_cast %32 : vector<1x1x16x4xf32> to vector<1x16x4xf32>
    %34 = arith.maximumf %31, %33 : vector<1x16x4xf32>
    %c0_36 = arith.constant 0 : index
    %c12 = arith.constant 12 : index
    %c0_37 = arith.constant 0 : index
    %c0_38 = arith.constant 0 : index
    %35 = tpu.strided_load %arg2[%c0_36, %c12, %c0_37, %c0_38] {strides = array<i32: 1, 16, 1, 1>} : memref<1x16x16x4xf32, #tpu.memory_space<vmem>>, vector<1x1x16x4xf32>
    %36 = vector.shape_cast %35 : vector<1x1x16x4xf32> to vector<1x16x4xf32>
    %37 = arith.maximumf %34, %36 : vector<1x16x4xf32>
    %c0_39 = arith.constant 0 : index
    %c13 = arith.constant 13 : index
    %c0_40 = arith.constant 0 : index
    %c0_41 = arith.constant 0 : index
    %38 = tpu.strided_load %arg2[%c0_39, %c13, %c0_40, %c0_41] {strides = array<i32: 1, 16, 1, 1>} : memref<1x16x16x4xf32, #tpu.memory_space<vmem>>, vector<1x1x16x4xf32>
    %39 = vector.shape_cast %38 : vector<1x1x16x4xf32> to vector<1x16x4xf32>
    %40 = arith.maximumf %37, %39 : vector<1x16x4xf32>
    %c0_42 = arith.constant 0 : index
    %c14 = arith.constant 14 : index
    %c0_43 = arith.constant 0 : index
    %c0_44 = arith.constant 0 : index
    %41 = tpu.strided_load %arg2[%c0_42, %c14, %c0_43, %c0_44] {strides = array<i32: 1, 16, 1, 1>} : memref<1x16x16x4xf32, #tpu.memory_space<vmem>>, vector<1x1x16x4xf32>
    %42 = vector.shape_cast %41 : vector<1x1x16x4xf32> to vector<1x16x4xf32>
    %43 = arith.maximumf %40, %42 : vector<1x16x4xf32>
    %c0_45 = arith.constant 0 : index
    %c15 = arith.constant 15 : index
    %c0_46 = arith.constant 0 : index
    %c0_47 = arith.constant 0 : index
    %44 = tpu.strided_load %arg2[%c0_45, %c15, %c0_46, %c0_47] {strides = array<i32: 1, 16, 1, 1>} : memref<1x16x16x4xf32, #tpu.memory_space<vmem>>, vector<1x1x16x4xf32>
    %45 = vector.shape_cast %44 : vector<1x1x16x4xf32> to vector<1x16x4xf32>
    %46 = arith.maximumf %43, %45 : vector<1x16x4xf32>
    %c0_48 = arith.constant 0 : index
    %c0_49 = arith.constant 0 : index
    %c0_50 = arith.constant 0 : index
    %47 = vector.load %arg4[%c0_48, %c0_49, %c0_50] : memref<4x16x4xf32, #tpu.memory_space<vmem>>, vector<1x16x4xf32>
    tpu.vector_store %arg4[%c0_48, %c0_49, %c0_50], %46 {strides = array<i32>} : memref<4x16x4xf32, #tpu.memory_space<vmem>>, vector<1x16x4xf32>,
    %c0_51 = arith.constant 0 : index
    %c0_52 = arith.constant 0 : index
    %c0_53 = arith.constant 0 : index
    %48 = tpu.strided_load %arg4[%c0_51, %c0_52, %c0_53] {strides = array<i32: 1, 16, 1>} : memref<4x16x4xf32, #tpu.memory_space<vmem>>, vector<1x1x4xf32>
    %c0_54 = arith.constant 0 : index
    %c1_55 = arith.constant 1 : index
    %c0_56 = arith.constant 0 : index
    %49 = tpu.strided_load %arg4[%c0_54, %c1_55, %c0_56] {strides = array<i32: 1, 16, 1>} : memref<4x16x4xf32, #tpu.memory_space<vmem>>, vector<1x1x4xf32>
    %50 = arith.maximumf %48, %49 : vector<1x1x4xf32>
    %c0_57 = arith.constant 0 : index
    %c2_58 = arith.constant 2 : index
    %c0_59 = arith.constant 0 : index
    %51 = tpu.strided_load %arg4[%c0_57, %c2_58, %c0_59] {strides = array<i32: 1, 16, 1>} : memref<4x16x4xf32, #tpu.memory_space<vmem>>, vector<1x1x4xf32>
    %52 = arith.maximumf %50, %51 : vector<1x1x4xf32>
    %c0_60 = arith.constant 0 : index
    %c3_61 = arith.constant 3 : index
    %c0_62 = arith.constant 0 : index
    %53 = tpu.strided_load %arg4[%c0_60, %c3_61, %c0_62] {strides = array<i32: 1, 16, 1>} : memref<4x16x4xf32, #tpu.memory_space<vmem>>, vector<1x1x4xf32>
    %54 = arith.maximumf %52, %53 : vector<1x1x4xf32>
    %c0_63 = arith.constant 0 : index
    %c4_64 = arith.constant 4 : index
    %c0_65 = arith.constant 0 : index
    %55 = tpu.strided_load %arg4[%c0_63, %c4_64, %c0_65] {strides = array<i32: 1, 16, 1>} : memref<4x16x4xf32, #tpu.memory_space<vmem>>, vector<1x1x4xf32>
    %56 = arith.maximumf %54, %55 : vector<1x1x4xf32>
    %c0_66 = arith.constant 0 : index
    %c5_67 = arith.constant 5 : index
    %c0_68 = arith.constant 0 : index
    %57 = tpu.strided_load %arg4[%c0_66, %c5_67, %c0_68] {strides = array<i32: 1, 16, 1>} : memref<4x16x4xf32, #tpu.memory_space<vmem>>, vector<1x1x4xf32>
    %58 = arith.maximumf %56, %57 : vector<1x1x4xf32>
    %c0_69 = arith.constant 0 : index
    %c6_70 = arith.constant 6 : index
    %c0_71 = arith.constant 0 : index
    %59 = tpu.strided_load %arg4[%c0_69, %c6_70, %c0_71] {strides = array<i32: 1, 16, 1>} : memref<4x16x4xf32, #tpu.memory_space<vmem>>, vector<1x1x4xf32>
    %60 = arith.maximumf %58, %59 : vector<1x1x4xf32>
    %c0_72 = arith.constant 0 : index
    %c7_73 = arith.constant 7 : index
    %c0_74 = arith.constant 0 : index
    %61 = tpu.strided_load %arg4[%c0_72, %c7_73, %c0_74] {strides = array<i32: 1, 16, 1>} : memref<4x16x4xf32, #tpu.memory_space<vmem>>, vector<1x1x4xf32>
    %62 = arith.maximumf %60, %61 : vector<1x1x4xf32>
    %c0_75 = arith.constant 0 : index
    %c8_76 = arith.constant 8 : index
    %c0_77 = arith.constant 0 : index
    %63 = tpu.strided_load %arg4[%c0_75, %c8_76, %c0_77] {strides = array<i32: 1, 16, 1>} : memref<4x16x4xf32, #tpu.memory_space<vmem>>, vector<1x1x4xf32>
    %64 = arith.maximumf %62, %63 : vector<1x1x4xf32>
    %c0_78 = arith.constant 0 : index
    %c9_79 = arith.constant 9 : index
    %c0_80 = arith.constant 0 : index
    %65 = tpu.strided_load %arg4[%c0_78, %c9_79, %c0_80] {strides = array<i32: 1, 16, 1>} : memref<4x16x4xf32, #tpu.memory_space<vmem>>, vector<1x1x4xf32>
    %66 = arith.maximumf %64, %65 : vector<1x1x4xf32>
    %c0_81 = arith.constant 0 : index
    %c10_82 = arith.constant 10 : index
    %c0_83 = arith.constant 0 : index
    %67 = tpu.strided_load %arg4[%c0_81, %c10_82, %c0_83] {strides = array<i32: 1, 16, 1>} : memref<4x16x4xf32, #tpu.memory_space<vmem>>, vector<1x1x4xf32>
    %68 = arith.maximumf %66, %67 : vector<1x1x4xf32>
    %c0_84 = arith.constant 0 : index
    %c11_85 = arith.constant 11 : index
    %c0_86 = arith.constant 0 : index
    %69 = tpu.strided_load %arg4[%c0_84, %c11_85, %c0_86] {strides = array<i32: 1, 16, 1>} : memref<4x16x4xf32, #tpu.memory_space<vmem>>, vector<1x1x4xf32>
    %70 = arith.maximumf %68, %69 : vector<1x1x4xf32>
    %c0_87 = arith.constant 0 : index
    %c12_88 = arith.constant 12 : index
    %c0_89 = arith.constant 0 : index
    %71 = tpu.strided_load %arg4[%c0_87, %c12_88, %c0_89] {strides = array<i32: 1, 16, 1>} : memref<4x16x4xf32, #tpu.memory_space<vmem>>, vector<1x1x4xf32>
    %72 = arith.maximumf %70, %71 : vector<1x1x4xf32>
    %c0_90 = arith.constant 0 : index
    %c13_91 = arith.constant 13 : index
    %c0_92 = arith.constant 0 : index
    %73 = tpu.strided_load %arg4[%c0_90, %c13_91, %c0_92] {strides = array<i32: 1, 16, 1>} : memref<4x16x4xf32, #tpu.memory_space<vmem>>, vector<1x1x4xf32>
    %74 = arith.maximumf %72, %73 : vector<1x1x4xf32>
    %c0_93 = arith.constant 0 : index
    %c14_94 = arith.constant 14 : index
    %c0_95 = arith.constant 0 : index
    %75 = tpu.strided_load %arg4[%c0_93, %c14_94, %c0_95] {strides = array<i32: 1, 16, 1>} : memref<4x16x4xf32, #tpu.memory_space<vmem>>, vector<1x1x4xf32>
    %76 = arith.maximumf %74, %75 : vector<1x1x4xf32>
    %c0_96 = arith.constant 0 : index
    %c15_97 = arith.constant 15 : index
    %c0_98 = arith.constant 0 : index
    %77 = tpu.strided_load %arg4[%c0_96, %c15_97, %c0_98] {strides = array<i32: 1, 16, 1>} : memref<4x16x4xf32, #tpu.memory_space<vmem>>, vector<1x1x4xf32>
    %78 = arith.maximumf %76, %77 : vector<1x1x4xf32>
    %79 = vector.shape_cast %78 : vector<1x1x4xf32> to vector<1x4xf32>
    %c0_99 = arith.constant 0 : index
    %c0_100 = arith.constant 0 : index
    %c0_101 = arith.constant 0 : index
    %80 = vector.load %arg3[%c0_99, %c0_100, %c0_101] : memref<1x21x4xf32, #tpu.memory_space<vmem>>, vector<1x1x4xf32>
    %81 = vector.shape_cast %80 : vector<1x1x4xf32> to vector<1x4xf32>
    %82 = vector.shape_cast %79 : vector<1x4xf32> to vector<1x1x4xf32>
    tpu.vector_store %arg3[%c0_99, %c0_100, %c0_101], %82 {strides = array<i32>} : memref<1x21x4xf32, #tpu.memory_space<vmem>>, vector<1x1x4xf32>,
    %c0_102 = arith.constant 0 : index
    %c0_103 = arith.constant 0 : index
    %c0_104 = arith.constant 0 : index
    %c0_105 = arith.constant 0 : index
    %83 = tpu.strided_load %arg2[%c0_102, %c0_103, %c0_104, %c0_105] {strides = array<i32: 1, 8, 1, 1>} : memref<1x16x16x4xf32, #tpu.memory_space<vmem>>, vector<1x2x16x4xf32>
    %84 = vector.shape_cast %83 : vector<1x2x16x4xf32> to vector<2x16x4xf32>
    %c0_106 = arith.constant 0 : index
    %c1_107 = arith.constant 1 : index
    %c0_108 = arith.constant 0 : index
    %c0_109 = arith.constant 0 : index
    %85 = tpu.strided_load %arg2[%c0_106, %c1_107, %c0_108, %c0_109] {strides = array<i32: 1, 8, 1, 1>} : memref<1x16x16x4xf32, #tpu.memory_space<vmem>>, vector<1x2x16x4xf32>
    %86 = vector.shape_cast %85 : vector<1x2x16x4xf32> to vector<2x16x4xf32>
    %87 = arith.maximumf %84, %86 : vector<2x16x4xf32>
    %c0_110 = arith.constant 0 : index
    %c2_111 = arith.constant 2 : index
    %c0_112 = arith.constant 0 : index
    %c0_113 = arith.constant 0 : index
    %88 = tpu.strided_load %arg2[%c0_110, %c2_111, %c0_112, %c0_113] {strides = array<i32: 1, 8, 1, 1>} : memref<1x16x16x4xf32, #tpu.memory_space<vmem>>, vector<1x2x16x4xf32>
    %89 = vector.shape_cast %88 : vector<1x2x16x4xf32> to vector<2x16x4xf32>
    %90 = arith.maximumf %87, %89 : vector<2x16x4xf32>
    %c0_114 = arith.constant 0 : index
    %c3_115 = arith.constant 3 : index
    %c0_116 = arith.constant 0 : index
    %c0_117 = arith.constant 0 : index
    %91 = tpu.strided_load %arg2[%c0_114, %c3_115, %c0_116, %c0_117] {strides = array<i32: 1, 8, 1, 1>} : memref<1x16x16x4xf32, #tpu.memory_space<vmem>>, vector<1x2x16x4xf32>
    %92 = vector.shape_cast %91 : vector<1x2x16x4xf32> to vector<2x16x4xf32>
    %93 = arith.maximumf %90, %92 : vector<2x16x4xf32>
    %c0_118 = arith.constant 0 : index
    %c4_119 = arith.constant 4 : index
    %c0_120 = arith.constant 0 : index
    %c0_121 = arith.constant 0 : index
    %94 = tpu.strided_load %arg2[%c0_118, %c4_119, %c0_120, %c0_121] {strides = array<i32: 1, 8, 1, 1>} : memref<1x16x16x4xf32, #tpu.memory_space<vmem>>, vector<1x2x16x4xf32>
    %95 = vector.shape_cast %94 : vector<1x2x16x4xf32> to vector<2x16x4xf32>
    %96 = arith.maximumf %93, %95 : vector<2x16x4xf32>
    %c0_122 = arith.constant 0 : index
    %c5_123 = arith.constant 5 : index
    %c0_124 = arith.constant 0 : index
    %c0_125 = arith.constant 0 : index
    %97 = tpu.strided_load %arg2[%c0_122, %c5_123, %c0_124, %c0_125] {strides = array<i32: 1, 8, 1, 1>} : memref<1x16x16x4xf32, #tpu.memory_space<vmem>>, vector<1x2x16x4xf32>
    %98 = vector.shape_cast %97 : vector<1x2x16x4xf32> to vector<2x16x4xf32>
    %99 = arith.maximumf %96, %98 : vector<2x16x4xf32>
    %c0_126 = arith.constant 0 : index
    %c6_127 = arith.constant 6 : index
    %c0_128 = arith.constant 0 : index
    %c0_129 = arith.constant 0 : index
    %100 = tpu.strided_load %arg2[%c0_126, %c6_127, %c0_128, %c0_129] {strides = array<i32: 1, 8, 1, 1>} : memref<1x16x16x4xf32, #tpu.memory_space<vmem>>, vector<1x2x16x4xf32>
    %101 = vector.shape_cast %100 : vector<1x2x16x4xf32> to vector<2x16x4xf32>
    %102 = arith.maximumf %99, %101 : vector<2x16x4xf32>
    %c0_130 = arith.constant 0 : index
    %c7_131 = arith.constant 7 : index
    %c0_132 = arith.constant 0 : index
    %c0_133 = arith.constant 0 : index
    %103 = tpu.strided_load %arg2[%c0_130, %c7_131, %c0_132, %c0_133] {strides = array<i32: 1, 8, 1, 1>} : memref<1x16x16x4xf32, #tpu.memory_space<vmem>>, vector<1x2x16x4xf32>
    %104 = vector.shape_cast %103 : vector<1x2x16x4xf32> to vector<2x16x4xf32>
    %105 = arith.maximumf %102, %104 : vector<2x16x4xf32>
    %c0_134 = arith.constant 0 : index
    %c0_135 = arith.constant 0 : index
    %c0_136 = arith.constant 0 : index
    %106 = vector.load %arg4[%c0_134, %c0_135, %c0_136] : memref<4x16x4xf32, #tpu.memory_space<vmem>>, vector<2x16x4xf32>
    tpu.vector_store %arg4[%c0_134, %c0_135, %c0_136], %105 {strides = array<i32>} : memref<4x16x4xf32, #tpu.memory_space<vmem>>, vector<2x16x4xf32>,
    %c0_137 = arith.constant 0 : index
    %c0_138 = arith.constant 0 : index
    %c0_139 = arith.constant 0 : index
    %107 = tpu.strided_load %arg4[%c0_137, %c0_138, %c0_139] {strides = array<i32: 1, 8, 1>} : memref<4x16x4xf32, #tpu.memory_space<vmem>>, vector<2x2x4xf32>
    %c0_140 = arith.constant 0 : index
    %c1_141 = arith.constant 1 : index
    %c0_142 = arith.constant 0 : index
    %108 = tpu.strided_load %arg4[%c0_140, %c1_141, %c0_142] {strides = array<i32: 1, 8, 1>} : memref<4x16x4xf32, #tpu.memory_space<vmem>>, vector<2x2x4xf32>
    %109 = arith.maximumf %107, %108 : vector<2x2x4xf32>
    %c0_143 = arith.constant 0 : index
    %c2_144 = arith.constant 2 : index
    %c0_145 = arith.constant 0 : index
    %110 = tpu.strided_load %arg4[%c0_143, %c2_144, %c0_145] {strides = array<i32: 1, 8, 1>} : memref<4x16x4xf32, #tpu.memory_space<vmem>>, vector<2x2x4xf32>
    %111 = arith.maximumf %109, %110 : vector<2x2x4xf32>
    %c0_146 = arith.constant 0 : index
    %c3_147 = arith.constant 3 : index
    %c0_148 = arith.constant 0 : index
    %112 = tpu.strided_load %arg4[%c0_146, %c3_147, %c0_148] {strides = array<i32: 1, 8, 1>} : memref<4x16x4xf32, #tpu.memory_space<vmem>>, vector<2x2x4xf32>
    %113 = arith.maximumf %111, %112 : vector<2x2x4xf32>
    %c0_149 = arith.constant 0 : index
    %c4_150 = arith.constant 4 : index
    %c0_151 = arith.constant 0 : index
    %114 = tpu.strided_load %arg4[%c0_149, %c4_150, %c0_151] {strides = array<i32: 1, 8, 1>} : memref<4x16x4xf32, #tpu.memory_space<vmem>>, vector<2x2x4xf32>
    %115 = arith.maximumf %113, %114 : vector<2x2x4xf32>
    %c0_152 = arith.constant 0 : index
    %c5_153 = arith.constant 5 : index
    %c0_154 = arith.constant 0 : index
    %116 = tpu.strided_load %arg4[%c0_152, %c5_153, %c0_154] {strides = array<i32: 1, 8, 1>} : memref<4x16x4xf32, #tpu.memory_space<vmem>>, vector<2x2x4xf32>
    %117 = arith.maximumf %115, %116 : vector<2x2x4xf32>
    %c0_155 = arith.constant 0 : index
    %c6_156 = arith.constant 6 : index
    %c0_157 = arith.constant 0 : index
    %118 = tpu.strided_load %arg4[%c0_155, %c6_156, %c0_157] {strides = array<i32: 1, 8, 1>} : memref<4x16x4xf32, #tpu.memory_space<vmem>>, vector<2x2x4xf32>
    %119 = arith.maximumf %117, %118 : vector<2x2x4xf32>
    %c0_158 = arith.constant 0 : index
    %c7_159 = arith.constant 7 : index
    %c0_160 = arith.constant 0 : index
    %120 = tpu.strided_load %arg4[%c0_158, %c7_159, %c0_160] {strides = array<i32: 1, 8, 1>} : memref<4x16x4xf32, #tpu.memory_space<vmem>>, vector<2x2x4xf32>
    %121 = arith.maximumf %119, %120 : vector<2x2x4xf32>
    %122 = vector.extract_strided_slice %121 {offsets = [0, 0, 0], sizes = [1, 2, 4], strides = [1, 1, 1]} : vector<2x2x4xf32> to vector<1x2x4xf32>
    %123 = vector.shape_cast %122 : vector<1x2x4xf32> to vector<2x4xf32>
    %c0_161 = arith.constant 0 : index
    %c1_162 = arith.constant 1 : index
    %c0_163 = arith.constant 0 : index
    %124 = vector.load %arg3[%c0_161, %c1_162, %c0_163] : memref<1x21x4xf32, #tpu.memory_space<vmem>>, vector<1x2x4xf32>
    %125 = vector.shape_cast %124 : vector<1x2x4xf32> to vector<2x4xf32>
    %126 = vector.shape_cast %123 : vector<2x4xf32> to vector<1x2x4xf32>
    tpu.vector_store %arg3[%c0_161, %c1_162, %c0_163], %126 {strides = array<i32>} : memref<1x21x4xf32, #tpu.memory_space<vmem>>, vector<1x2x4xf32>,
    %127 = vector.extract_strided_slice %121 {offsets = [1, 0, 0], sizes = [1, 2, 4], strides = [1, 1, 1]} : vector<2x2x4xf32> to vector<1x2x4xf32>
    %128 = vector.shape_cast %127 : vector<1x2x4xf32> to vector<2x4xf32>
    %c0_164 = arith.constant 0 : index
    %c3_165 = arith.constant 3 : index
    %c0_166 = arith.constant 0 : index
    %129 = vector.load %arg3[%c0_164, %c3_165, %c0_166] : memref<1x21x4xf32, #tpu.memory_space<vmem>>, vector<1x2x4xf32>
    %130 = vector.shape_cast %129 : vector<1x2x4xf32> to vector<2x4xf32>
    %131 = vector.shape_cast %128 : vector<2x4xf32> to vector<1x2x4xf32>
    tpu.vector_store %arg3[%c0_164, %c3_165, %c0_166], %131 {strides = array<i32>} : memref<1x21x4xf32, #tpu.memory_space<vmem>>, vector<1x2x4xf32>,
    %c0_167 = arith.constant 0 : index
    %c0_168 = arith.constant 0 : index
    %c0_169 = arith.constant 0 : index
    %c0_170 = arith.constant 0 : index
    %132 = tpu.strided_load %arg2[%c0_167, %c0_168, %c0_169, %c0_170] {strides = array<i32: 1, 4, 1, 1>} : memref<1x16x16x4xf32, #tpu.memory_space<vmem>>, vector<1x4x16x4xf32>
    %133 = vector.shape_cast %132 : vector<1x4x16x4xf32> to vector<4x16x4xf32>
    %c0_171 = arith.constant 0 : index
    %c1_172 = arith.constant 1 : index
    %c0_173 = arith.constant 0 : index
    %c0_174 = arith.constant 0 : index
    %134 = tpu.strided_load %arg2[%c0_171, %c1_172, %c0_173, %c0_174] {strides = array<i32: 1, 4, 1, 1>} : memref<1x16x16x4xf32, #tpu.memory_space<vmem>>, vector<1x4x16x4xf32>
    %135 = vector.shape_cast %134 : vector<1x4x16x4xf32> to vector<4x16x4xf32>
    %136 = arith.maximumf %133, %135 : vector<4x16x4xf32>
    %c0_175 = arith.constant 0 : index
    %c2_176 = arith.constant 2 : index
    %c0_177 = arith.constant 0 : index
    %c0_178 = arith.constant 0 : index
    %137 = tpu.strided_load %arg2[%c0_175, %c2_176, %c0_177, %c0_178] {strides = array<i32: 1, 4, 1, 1>} : memref<1x16x16x4xf32, #tpu.memory_space<vmem>>, vector<1x4x16x4xf32>
    %138 = vector.shape_cast %137 : vector<1x4x16x4xf32> to vector<4x16x4xf32>
    %139 = arith.maximumf %136, %138 : vector<4x16x4xf32>
    %c0_179 = arith.constant 0 : index
    %c3_180 = arith.constant 3 : index
    %c0_181 = arith.constant 0 : index
    %c0_182 = arith.constant 0 : index
    %140 = tpu.strided_load %arg2[%c0_179, %c3_180, %c0_181, %c0_182] {strides = array<i32: 1, 4, 1, 1>} : memref<1x16x16x4xf32, #tpu.memory_space<vmem>>, vector<1x4x16x4xf32>
    %141 = vector.shape_cast %140 : vector<1x4x16x4xf32> to vector<4x16x4xf32>
    %142 = arith.maximumf %139, %141 : vector<4x16x4xf32>
    %c0_183 = arith.constant 0 : index
    %c0_184 = arith.constant 0 : index
    %c0_185 = arith.constant 0 : index
    %143 = vector.load %arg4[%c0_183, %c0_184, %c0_185] : memref<4x16x4xf32, #tpu.memory_space<vmem>>, vector<4x16x4xf32>
    tpu.vector_store %arg4[%c0_183, %c0_184, %c0_185], %142 {strides = array<i32>} : memref<4x16x4xf32, #tpu.memory_space<vmem>>, vector<4x16x4xf32>,
    %c0_186 = arith.constant 0 : index
    %c0_187 = arith.constant 0 : index
    %c0_188 = arith.constant 0 : index
    %144 = tpu.strided_load %arg4[%c0_186, %c0_187, %c0_188] {strides = array<i32: 1, 4, 1>} : memref<4x16x4xf32, #tpu.memory_space<vmem>>, vector<4x4x4xf32>
    %c0_189 = arith.constant 0 : index
    %c1_190 = arith.constant 1 : index
    %c0_191 = arith.constant 0 : index
    %145 = tpu.strided_load %arg4[%c0_189, %c1_190, %c0_191] {strides = array<i32: 1, 4, 1>} : memref<4x16x4xf32, #tpu.memory_space<vmem>>, vector<4x4x4xf32>
    %146 = arith.maximumf %144, %145 : vector<4x4x4xf32>
    %c0_192 = arith.constant 0 : index
    %c2_193 = arith.constant 2 : index
    %c0_194 = arith.constant 0 : index
    %147 = tpu.strided_load %arg4[%c0_192, %c2_193, %c0_194] {strides = array<i32: 1, 4, 1>} : memref<4x16x4xf32, #tpu.memory_space<vmem>>, vector<4x4x4xf32>
    %148 = arith.maximumf %146, %147 : vector<4x4x4xf32>
    %c0_195 = arith.constant 0 : index
    %c3_196 = arith.constant 3 : index
    %c0_197 = arith.constant 0 : index
    %149 = tpu.strided_load %arg4[%c0_195, %c3_196, %c0_197] {strides = array<i32: 1, 4, 1>} : memref<4x16x4xf32, #tpu.memory_space<vmem>>, vector<4x4x4xf32>
    %150 = arith.maximumf %148, %149 : vector<4x4x4xf32>
    %151 = vector.extract_strided_slice %150 {offsets = [0, 0, 0], sizes = [1, 4, 4], strides = [1, 1, 1]} : vector<4x4x4xf32> to vector<1x4x4xf32>
    %152 = vector.shape_cast %151 : vector<1x4x4xf32> to vector<4x4xf32>
    %c0_198 = arith.constant 0 : index
    %c5_199 = arith.constant 5 : index
    %c0_200 = arith.constant 0 : index
    %153 = vector.load %arg3[%c0_198, %c5_199, %c0_200] : memref<1x21x4xf32, #tpu.memory_space<vmem>>, vector<1x4x4xf32>
    %154 = vector.shape_cast %153 : vector<1x4x4xf32> to vector<4x4xf32>
    %155 = vector.shape_cast %152 : vector<4x4xf32> to vector<1x4x4xf32>
    tpu.vector_store %arg3[%c0_198, %c5_199, %c0_200], %155 {strides = array<i32>} : memref<1x21x4xf32, #tpu.memory_space<vmem>>, vector<1x4x4xf32>,
    %156 = vector.extract_strided_slice %150 {offsets = [1, 0, 0], sizes = [1, 4, 4], strides = [1, 1, 1]} : vector<4x4x4xf32> to vector<1x4x4xf32>
    %157 = vector.shape_cast %156 : vector<1x4x4xf32> to vector<4x4xf32>
    %c0_201 = arith.constant 0 : index
    %c9_202 = arith.constant 9 : index
    %c0_203 = arith.constant 0 : index
    %158 = vector.load %arg3[%c0_201, %c9_202, %c0_203] : memref<1x21x4xf32, #tpu.memory_space<vmem>>, vector<1x4x4xf32>
    %159 = vector.shape_cast %158 : vector<1x4x4xf32> to vector<4x4xf32>
    %160 = vector.shape_cast %157 : vector<4x4xf32> to vector<1x4x4xf32>
    tpu.vector_store %arg3[%c0_201, %c9_202, %c0_203], %160 {strides = array<i32>} : memref<1x21x4xf32, #tpu.memory_space<vmem>>, vector<1x4x4xf32>,
    %161 = vector.extract_strided_slice %150 {offsets = [2, 0, 0], sizes = [1, 4, 4], strides = [1, 1, 1]} : vector<4x4x4xf32> to vector<1x4x4xf32>
    %162 = vector.shape_cast %161 : vector<1x4x4xf32> to vector<4x4xf32>
    %c0_204 = arith.constant 0 : index
    %c13_205 = arith.constant 13 : index
    %c0_206 = arith.constant 0 : index
    %163 = vector.load %arg3[%c0_204, %c13_205, %c0_206] : memref<1x21x4xf32, #tpu.memory_space<vmem>>, vector<1x4x4xf32>
    %164 = vector.shape_cast %163 : vector<1x4x4xf32> to vector<4x4xf32>
    %165 = vector.shape_cast %162 : vector<4x4xf32> to vector<1x4x4xf32>
    tpu.vector_store %arg3[%c0_204, %c13_205, %c0_206], %165 {strides = array<i32>} : memref<1x21x4xf32, #tpu.memory_space<vmem>>, vector<1x4x4xf32>,
    %166 = vector.extract_strided_slice %150 {offsets = [3, 0, 0], sizes = [1, 4, 4], strides = [1, 1, 1]} : vector<4x4x4xf32> to vector<1x4x4xf32>
    %167 = vector.shape_cast %166 : vector<1x4x4xf32> to vector<4x4xf32>
    %c0_207 = arith.constant 0 : index
    %c17 = arith.constant 17 : index
    %c0_208 = arith.constant 0 : index
    %168 = vector.load %arg3[%c0_207, %c17, %c0_208] : memref<1x21x4xf32, #tpu.memory_space<vmem>>, vector<1x4x4xf32>
    %169 = vector.shape_cast %168 : vector<1x4x4xf32> to vector<4x4xf32>
    %170 = vector.shape_cast %167 : vector<4x4xf32> to vector<1x4x4xf32>
    tpu.vector_store %arg3[%c0_207, %c17, %c0_208], %170 {strides = array<i32>} : memref<1x21x4xf32, #tpu.memory_space<vmem>>, vector<1x4x4xf32>,
    return
  }
  func.func @transform_0(%arg0: i32, %arg1: i32) -> (i32, i32, i32, i32) {
    %c0_i32 = arith.constant 0 : i32
    %c0_i32_0 = arith.constant 0 : i32
    %c0_i32_1 = arith.constant 0 : i32
    return %arg0, %c0_i32, %c0_i32_0, %arg1 : i32, i32, i32, i32
  }
  func.func @transform_1(%arg0: i32, %arg1: i32) -> (i32, i32, i32) {
    %c0_i32 = arith.constant 0 : i32
    %c0_i32_0 = arith.constant 0 : i32
    return %arg0, %c0_i32, %arg1 : i32, i32, i32
  }
}

</mosaic_0001>

<bundles_post_ra>
// kernel: tpu_custom_call.1
= control target key start
LH: loop header
LB: loop body
LE: loop exit
PB: predicated region body
PF: predicated region fallthrough
CT: control target
= control target key end

     0   :  { %s721_s6 = smov 0   ;;  %s723_s7 = smov 0   ;;  %s862_s0 = inlined_call_operand.vmem [shape: f32[2,16,16,4], index: 0, kind: input, shape index: {}]   ;;  %s863_s1 = inlined_call_operand.vmem [shape: f32[2,21,4], index: 1, kind: output, shape index: {}]  }
   0x1   :  { %s725_s8 = smov 0  }
   0x2 LB: > { %s23_s9 = sadd.s32 1, %s705_s7  ;;  %p573_p0 = scmp.ge.s32.totalorder %s709_s8, 1  ;;  %s709_s8 = sphi %s725_s8, %s11_s8   ;;  %s705_s7 = sphi %s723_s7, %s865_s7   ;;  %s701_s6 = sphi %s721_s6, %s864_s6  }
   0x3   : > { %p25_p1 = scmp.ge.s32.totalorder %s23_s9, 2  ;;  %p106_p2 = scmp.lt.s32.totalorder %s709_s8, 3 }
   0x5   : > { %s867_s9 = smov (%p25_p1, %s23_s9), 0  ;;  %p107_p3 = pnand %p573_p0, %p106_p2 }
   0x6   : > { %p132_p4 = scmp.lt.s32.totalorder (!%p107_p3), %s701_s6, 1 }
   0x7   : > { %110 = sbr.rel (%p107_p3) target bundleno = 89 (0x59), region = 24 }
   0xc   : > { %s869_s6 = smov (!%p132_p4, %s701_s6), 1  ;;  %vm225_vm0 = vcmask 31744   ;;  %vm378_vm1 = vcmask 25600   ;;  %vm481_vm2 = vcmask 27648   ;;  %vm274_vm3 = vcmask 24576  }
   0xd   : > { %s661_s10 = sshll.u32 %s869_s6, 8  ;;  %s662_s14 = smul.u32 24, %s869_s6 }
   0xe   : > { %s745_s13 = scalar_lea.vmem %s862_s0, %s661_s10 }
   0xf   : > { %v148_v0 = vld [vmem:[%s745_s13] sm:$0xff]  ;;  %v577_v1 = vld [vmem:[%s745_s13 + $0x10] sm:$0xff]  ;;  %v149_v13 = vld [vmem:[%s745_s13 + $0x8] sm:$0xff]  ;;  %s829_s17 = scalar_lea.vmem %s863_s1, %s662_s14 }
  0x10   : > { %v579_v2 = vld [vmem:[%s745_s13 + $0x20] sm:$0xff]  ;;  %v153_v3 = vmax.f32 %v148_v0, %v577_v1  ;;  %v581_v4 = vld [vmem:[%s745_s13 + $0x30] sm:$0xff]  ;;  %v578_v14 = vld [vmem:[%s745_s13 + $0x18] sm:$0xff] }
  0x11   : > { %v591_v6 = vld [vmem:[%s745_s13 + $0x80] sm:$0xff]  ;;  %v593_v7 = vld [vmem:[%s745_s13 + $0x90] sm:$0xff]  ;;  %v154_v16 = vmax.f32 %v149_v13, %v578_v14  ;;  %v580_v17 = vld [vmem:[%s745_s13 + $0x28] sm:$0xff] }
  0x12   : > { %v158_v5 = vmax.f32 %v153_v3, %v579_v2  ;;  %v595_v8 = vld [vmem:[%s745_s13 + $0xa0] sm:$0xff]  ;;  %v286_v10 = vmax.f32 %v591_v6, %v593_v7  ;;  %v597_v12 = vld [vmem:[%s745_s13 + $0xb0] sm:$0xff]  ;;  %v582_v22 = vld [vmem:[%s745_s13 + $0x38] sm:$0xff] }
  0x13   : > { %v755_v9 = vld [vmem:[%s745_s13 + $0x40] sm:$0xff]  ;;  %v763_v15 = vld [vmem:[%s745_s13 + $0x50] sm:$0xff]  ;;  %v159_v23 = vmax.f32 %v154_v16, %v580_v17  ;;  %v592_v24 = vld [vmem:[%s745_s13 + $0x88] sm:$0xff] }
  0x14   : > { %v757_v11 = vmax.f32 %v158_v5, %v581_v4  ;;  %v294_v18 = vmax.f32 %v286_v10, %v595_v8  ;;  %v769_v20 = vld [vmem:[%s745_s13 + $0x60] sm:$0xff]  ;;  %v594_v25 = vld [vmem:[%s745_s13 + $0x98] sm:$0xff]  ;;  %v596_v26 = vld [vmem:[%s745_s13 + $0xa8] sm:$0xff]  ;;  %v399_v5 = vmax.f32 %v755_v9, %v763_v15 }
  0x15   : > { %v599_v21 = vld [vmem:[%s745_s13 + $0xc0] sm:$0xff]  ;;  %v601_v29 = vld [vmem:[%s745_s13 + $0xd0] sm:$0xff]  ;;  %v584_v30 = vld [vmem:[%s745_s13 + $0x48] sm:$0xff]  ;;  %v287_v31 = vmax.f32 %v592_v24, %v594_v25  ;;  %v782_v33 = vmax.f32 %v159_v23, %v582_v22 }
  0x16   : > { %v168_v19 = vmax.f32 %v757_v11, %v755_v9  ;;  %v302_v27 = vmax.f32 %v294_v18, %v597_v12  ;;  %v780_v32 = vld [vmem:[%s745_s13 + $0x70] sm:$0xff]  ;;  %v598_v34 = vld [vmem:[%s745_s13 + $0xb8] sm:$0xff]  ;;  %v603_v37 = vld [vmem:[%s745_s13 + $0xe0] sm:$0xff]  ;;  %v403_v2 = vmax.f32 %v599_v21, %v601_v29 }
  0x17   : > { %v586_v38 = vld [vmem:[%s745_s13 + $0x58] sm:$0xff]  ;;  %v295_v39 = vmax.f32 %v287_v31, %v596_v26  ;;  %v169_v40 = vmax.f32 %v782_v33, %v584_v30  ;;  %v600_v41 = vld [vmem:[%s745_s13 + $0xc8] sm:$0xff]  ;;  %v605_v44 = vld [vmem:[%s745_s13 + $0xf0] sm:$0xff] }
  0x18   : > { %v173_v28 = vmax.f32 %v168_v19, %v763_v15  ;;  %v310_v35 = vmax.f32 %v302_v27, %v599_v21  ;;  %441 = vst.msk [vmem:[#allocation2 + $0x20] sm:$0xff] %vm225_vm0, %v302_v27  ;;  %v588_v45 = vld [vmem:[%s745_s13 + $0x68] sm:$0xff]  ;;  %v602_v48 = vld [vmem:[%s745_s13 + $0xd8] sm:$0xff]  ;;  %v400_v14 = vmax.f32 %v584_v30, %v586_v38 }
  0x19   : > { %v303_v46 = vmax.f32 %v295_v39, %v598_v34  ;;  %v174_v47 = vmax.f32 %v169_v40, %v586_v38  ;;  %v590_v51 = vld [vmem:[%s745_s13 + $0x78] sm:$0xff]  ;;  %v604_v54 = vld [vmem:[%s745_s13 + $0xe8] sm:$0xff]  ;;  %v404_v3 = vmax.f32 %v600_v41, %v602_v48 }
  0x1a   : > { %v178_v36 = vmax.f32 %v173_v28, %v769_v20  ;;  %v318_v42 = vmax.f32 %v310_v35, %v601_v29  ;;  %v606_v59 = vld [vmem:[%s745_s13 + $0xf8] sm:$0xff]  ;;  %v416_v22 = vmax.f32 %v400_v14, %v588_v45 }
  0x1b   : > { %v311_v52 = vmax.f32 %v303_v46, %v600_v41  ;;  %442 = vst.msk [vmem:[#allocation2 + $0x28] sm:$0xff] %vm225_vm0, %v303_v46  ;;  %v179_v53 = vmax.f32 %v174_v47, %v588_v45  ;;  %v420_v10 = vmax.f32 %v404_v3, %v604_v54 }
  0x1c   : > { %v792_v43 = vmax.f32 %v178_v36, %v780_v32  ;;  %v326_v49 = vmax.f32 %v318_v42, %v603_v37  ;;  %v432_v31 = vmax.f32 %v416_v22, %v590_v51 }
  0x1d   : > { %v319_v57 = vmax.f32 %v311_v52, %v602_v48  ;;  %v801_v58 = vmax.f32 %v179_v53, %v590_v51  ;;  %v436_v17 = vmax.f32 %v420_v10, %v606_v59 }
  0x1e   : > { %v188_v50 = vmax.f32 %v792_v43, %v591_v6  ;;  %v334_v55 = vmax.f32 %v326_v49, %v605_v44 }
  0x1f   : > { %v327_v61 = vmax.f32 %v319_v57, %v604_v54  ;;  %v189_v62 = vmax.f32 %v801_v58, %v592_v24  ;;  %444 = vst.msk [vmem:[#allocation2 + $0x38] sm:$0xff] %vm225_vm0, %v436_v17 }
  0x20   : > { %v193_v56 = vmax.f32 %v188_v50, %v593_v7  ;;  %338 = vst.msk [vmem:[#allocation2 + $0x10] sm:$0xff] %vm225_vm0, %v334_v55  ;;  %v419_v7 = vmax.f32 %v403_v2, %v603_v37 }
  0x21   : > { %v335_v0 = vmax.f32 %v327_v61, %v606_v59  ;;  %v194_v1 = vmax.f32 %v189_v62, %v594_v25 }
  0x22   : > { %v198_v60 = vmax.f32 %v193_v56, %v595_v8  ;;  %v435_v16 = vmax.f32 %v419_v7, %v605_v44  ;;  %v454_v39 = vld [vmem:[#allocation2 + $0x21] ss:$4 sm:$0xf]  ;;  %v464_v40 = vld [vmem:[#allocation2 + $0x22] ss:$4 sm:$0xf] }
  0x23   : > { %339 = vst.msk [vmem:[#allocation2 + $0x18] sm:$0xff] %vm225_vm0, %v335_v0  ;;  %v199_v6 = vmax.f32 %v194_v1, %v596_v26  ;;  %v474_v55 = vld [vmem:[#allocation2 + $0x23] ss:$4 sm:$0xf] }
  0x24   : > { %v203_v63 = vmax.f32 %v198_v60, %v597_v12  ;;  %v415_v12 = vmax.f32 %v399_v5, %v769_v20  ;;  %443 = vst.msk [vmem:[#allocation2 + $0x30] sm:$0xff] %vm225_vm0, %v435_v16 }
  0x25   : > { %v204_v8 = vmax.f32 %v199_v6, %v598_v34 }
  0x26   : > { %v208_v4 = vmax.f32 %v203_v63, %v599_v21  ;;  %v431_v25 = vmax.f32 %v415_v12, %v780_v32 }
  0x27   : > { %v209_v19 = vmax.f32 %v204_v8, %v600_v41 }
  0x28   : > { %v213_v13 = vmax.f32 %v208_v4, %v601_v29 }
  0x29   : > { %v214_v23 = vmax.f32 %v209_v19, %v602_v48 }
  0x2a   : > { %v218_v18 = vmax.f32 %v213_v13, %v603_v37  ;;  %v342_v9 = vld [vmem:[#allocation2 + $0x10] ss:$8 sm:$0x3]  ;;  %v345_v15 = vld [vmem:[#allocation2 + $0x11] ss:$8 sm:$0x3] }
  0x2b   : > { %v350_v24 = vld [vmem:[#allocation2 + $0x12] ss:$8 sm:$0x3]  ;;  %v347_v26 = vmax.f32 %v342_v9, %v345_v15  ;;  %v219_v27 = vmax.f32 %v214_v23, %v604_v54  ;;  %v355_v28 = vld [vmem:[#allocation2 + $0x13] ss:$8 sm:$0x3] }
  0x2c   : > { %v223_v21 = vmax.f32 %v218_v18, %v605_v44  ;;  %v360_v20 = vld [vmem:[#allocation2 + $0x14] ss:$8 sm:$0x3]  ;;  %v365_v29 = vld [vmem:[#allocation2 + $0x15] ss:$8 sm:$0x3] }
  0x2d   : > { %v370_v30 = vld [vmem:[#allocation2 + $0x16] ss:$8 sm:$0x3]  ;;  %v352_v34 = vmax.f32 %v347_v26, %v350_v24  ;;  %v224_v35 = vmax.f32 %v219_v27, %v606_v59  ;;  %v375_v36 = vld [vmem:[#allocation2 + $0x17] ss:$8 sm:$0x3] }
  0x2e   : > { %226 = vst.msk [vmem:[#allocation2] sm:$0xff] %vm225_vm0, %v223_v21  ;;  %v448_v37 = vld [vmem:[#allocation2 + $0x20] ss:$4 sm:$0xf] }
  0x2f   : > { %439 = vst.msk [vmem:[#allocation2 + $0x10] sm:$0xff] %vm225_vm0, %v431_v25  ;;  %v357_v38 = vmax.f32 %v352_v34, %v355_v28  ;;  %v459_v44 = vmax.f32 %v448_v37, %v454_v39  ;;  %v450_v4 = vld [vmem:[#allocation2 + $0x30] ss:$4 sm:$0xf] }
  0x30   : > { %227 = vst.msk [vmem:[#allocation2 + $0x8] sm:$0xff] %vm225_vm0, %v224_v35  ;;  %v456_v8 = vld [vmem:[#allocation2 + $0x31] ss:$4 sm:$0xf] }
  0x31   : > { %440 = vst.msk [vmem:[#allocation2 + $0x18] sm:$0xff] %vm225_vm0, %v432_v31  ;;  %v362_v32 = vmax.f32 %v357_v38, %v360_v20  ;;  %v469_v54 = vmax.f32 %v459_v44, %v464_v40  ;;  %v460_v17 = vmax.f32 %v450_v4, %v456_v8  ;;  %v466_v18 = vld [vmem:[#allocation2 + $0x32] ss:$4 sm:$0xf] }
  0x32   : > { %v476_v23 = vld [vmem:[#allocation2 + $0x33] ss:$4 sm:$0xf] }
  0x33   : > { %v367_v47 = vmax.f32 %v362_v32, %v365_v29  ;;  %v479_v3 = vmax.f32 %v469_v54, %v474_v55  ;;  %v470_v22 = vmax.f32 %v460_v17, %v466_v18 }
  0x35   : > { %v818_v41 = vld [vmem:[#allocation2] ss:$16 sm:$0x1]  ;;  %v820_v42 = vld [vmem:[#allocation2 + $0x1] ss:$16 sm:$0x1]  ;;  %v372_v53 = vmax.f32 %v367_v47, %v370_v30  ;;  %v480_v35 = vmax.f32 %v470_v22, %v476_v23 }
  0x36   : > { %v822_v45 = vld [vmem:[#allocation2 + $0x2] ss:$16 sm:$0x1]  ;;  %v236_v46 = vld [vmem:[#allocation2 + $0x3] ss:$16 sm:$0x1] }
  0x37   : > { %v239_v48 = vld [vmem:[#allocation2 + $0x4] ss:$16 sm:$0x1]  ;;  %v242_v49 = vld [vmem:[#allocation2 + $0x5] ss:$16 sm:$0x1]  ;;  %v377_v62 = vmax.f32 %v372_v53, %v375_v36  ;;  %v231_v36 = vmax.f32 %v818_v41, %v820_v42 }
  0x38   : > { %v237_v50 = vmax.f32 %v239_v48, %v236_v46  ;;  %v245_v51 = vld [vmem:[#allocation2 + $0x6] ss:$16 sm:$0x1]  ;;  %v248_v52 = vld [vmem:[#allocation2 + $0x7] ss:$16 sm:$0x1] }
  0x39   : > { %336 = vst.msk [vmem:[#allocation2] sm:$0xff] %vm225_vm0, %v792_v43  ;;  %v251_v57 = vld [vmem:[#allocation2 + $0x8] ss:$16 sm:$0x1] }
  0x3a   : > { %v240_v56 = vmax.f32 %v237_v50, %v242_v49  ;;  %v254_v59 = vld [vmem:[#allocation2 + $0x9] ss:$16 sm:$0x1]  ;;  %v257_v60 = vld [vmem:[#allocation2 + $0xa] ss:$16 sm:$0x1] }
  0x3b   : > { %v260_v61 = vld [vmem:[#allocation2 + $0xb] ss:$16 sm:$0x1]  ;;  %v263_v0 = vld [vmem:[#allocation2 + $0xc] ss:$16 sm:$0x1] }
  0x3c   : > { %v243_v63 = vmax.f32 %v240_v56, %v245_v51  ;;  %v266_v1 = vld [vmem:[#allocation2 + $0xd] ss:$16 sm:$0x1]  ;;  %v269_v43 = vld [vmem:[#allocation2 + $0xe] ss:$16 sm:$0x1] }
  0x3d   : > { %v272_v2 = vld [vmem:[#allocation2 + $0xf] ss:$16 sm:$0x1]  ;;  %v446_v6 = vld [vmem:[#allocation2 + $0x10] ss:$4 sm:$0xf] }
  0x3e   : > { %v246_v5 = vmax.f32 %v243_v63, %v248_v52  ;;  %337 = vst.msk [vmem:[#allocation2 + $0x8] sm:$0xff] %vm225_vm0, %v801_v58  ;;  %v452_v7 = vld [vmem:[#allocation2 + $0x11] ss:$4 sm:$0xf] }
  0x3f   : > { %380 = vst.msk [vmem:[%s829_s17 + $0x3] sm:$0x3] %vm378_vm1, %v377_v62  ;;  %v458_v13 = vmax.f32 %v446_v6, %v452_v7  ;;  %v462_v14 = vld [vmem:[#allocation2 + $0x12] ss:$4 sm:$0xf] }
  0x40   : > { %v249_v10 = vmax.f32 %v246_v5, %v251_v57  ;;  %484 = vst.msk [vmem:[%s829_s17 + $0xd] sm:$0xf] %vm481_vm2, %v479_v3  ;;  %v472_v21 = vld [vmem:[#allocation2 + $0x13] ss:$4 sm:$0xf] }
  0x41   : > { %v468_v12 = vmax.f32 %v458_v13, %v462_v14  ;;  %485 = vst.msk [vmem:[%s829_s17 + $0x11] sm:$0xf] %vm481_vm2, %v480_v35 }
  0x42   : > { %v252_v16 = vmax.f32 %v249_v10, %v254_v59 }
  0x43   : > { %v478_v20 = vmax.f32 %v468_v12, %v472_v21 }
  0x44   : > { %v255_v19 = vmax.f32 %v252_v16, %v257_v60 }
  0x45   : > { %v340_v58 = vld [vmem:[#allocation2] ss:$8 sm:$0x3]  ;;  %v343_v9 = vld [vmem:[#allocation2 + $0x1] ss:$8 sm:$0x3] }
  0x46   : > { %v258_v15 = vmax.f32 %v255_v19, %v260_v61  ;;  %v348_v24 = vld [vmem:[#allocation2 + $0x2] ss:$8 sm:$0x3]  ;;  %v353_v25 = vld [vmem:[#allocation2 + $0x3] ss:$8 sm:$0x3]  ;;  %v346_v26 = vmax.f32 %v340_v58, %v343_v9 }
  0x47   : > { %v358_v27 = vld [vmem:[#allocation2 + $0x4] ss:$8 sm:$0x3]  ;;  %v363_v28 = vld [vmem:[#allocation2 + $0x5] ss:$8 sm:$0x3] }
  0x48   : > { %v261_v29 = vmax.f32 %v258_v15, %v263_v0  ;;  %v368_v30 = vld [vmem:[#allocation2 + $0x6] ss:$8 sm:$0x3]  ;;  %v373_v31 = vld [vmem:[#allocation2 + $0x7] ss:$8 sm:$0x3]  ;;  %v351_v34 = vmax.f32 %v346_v26, %v348_v24 }
  0x49   : > { %437 = vst.msk [vmem:[#allocation2] sm:$0xff] %vm225_vm0, %v757_v11  ;;  %v234_v11 = vmax.f32 %v231_v36, %v822_v45 }
  0x4a   : > { %v264_v37 = vmax.f32 %v261_v29, %v266_v1  ;;  %438 = vst.msk [vmem:[#allocation2 + $0x8] sm:$0xff] %vm225_vm0, %v782_v33  ;;  %v356_v38 = vmax.f32 %v351_v34, %v353_v25 }
  0x4b   : > { %483 = vst.msk [vmem:[%s829_s17 + $0x9] sm:$0xf] %vm481_vm2, %v478_v20 }
  0x4c   : > { %v267_v39 = vmax.f32 %v264_v37, %v269_v43  ;;  %v361_v32 = vmax.f32 %v356_v38, %v358_v27 }
  0x4e   : > { %v270_v40 = vmax.f32 %v267_v39, %v272_v2  ;;  %v366_v44 = vmax.f32 %v361_v32, %v363_v28 }
  0x50   : > { %v371_v46 = vmax.f32 %v366_v44, %v368_v30  ;;  %v273_v41 = vmax.f32 %v270_v40, %v234_v11 }
  0x51   : > { %v445_v42 = vld [vmem:[#allocation2] ss:$4 sm:$0xf]  ;;  %v451_v47 = vld [vmem:[#allocation2 + $0x1] ss:$4 sm:$0xf] }
  0x52   : > { %v376_v33 = vmax.f32 %v371_v46, %v373_v31  ;;  %v457_v48 = vmax.f32 %v445_v42, %v451_v47  ;;  %v461_v49 = vld [vmem:[#allocation2 + $0x2] ss:$4 sm:$0xf]  ;;  %v471_v50 = vld [vmem:[#allocation2 + $0x3] ss:$4 sm:$0xf] }
  0x53   : > { %275 = vst.msk [vmem:[%s829_s17] sm:$0x1] %vm274_vm3, %v273_v41 }
  0x54   : > { %379 = vst.msk [vmem:[%s829_s17 + $0x1] sm:$0x3] %vm378_vm1, %v376_v33  ;;  %v467_v51 = vmax.f32 %v457_v48, %v461_v49 }
  0x56   : > { %v477_v52 = vmax.f32 %v467_v51, %v471_v50 }
  0x58   : > { %482 = vst.msk [vmem:[%s829_s17 + $0x5] sm:$0xf] %vm481_vm2, %v477_v52 }
  0x59 PF: > { %s11_s8 = sadd.s32 1, %s709_s8   ;;  %s864_s6 = smov %s705_s7 }
  0x5a   : > { %p8_p5 = scmp.ge.s32.totalorder %s11_s8, 4   ;;  %s865_s7 = smov %s867_s9 }
  0x5c   :  { %10 = sbr.rel (!%p8_p5) target bundleno = 2 (0x2), region = 100 }

</bundles_post_ra>
